<compile_context>
chip_gen: v5e
topology: v5e:2x2
jax: 0.10.0
libtpu: 0.0.40
codegen_flags: <defaults>
</compile_context>

<pallas_src>
import functools

import jax
import jax.numpy as jnp
import numpy as np
from jax import lax
from jax.experimental import pallas as pl
from jax.experimental.pallas import tpu as pltpu


_INV_SQRT2 = 0.7071067811865476
_SQRT_2_OVER_PI = 0.7978845608028654


def _gelu_exact(x):
    # PyTorch nn.GELU() default = exact (erf-based) GELU.  erf lowers to a VPU
    # polynomial (binding unit); see _gelu_tanh for the EUP-friendly variant.
    return 0.5 * x * (1.0 + lax.erf(x * _INV_SQRT2))


def _gelu_tanh(x):
    # tanh-approximate GELU: tanh issues on the EUP (otherwise-idle slot).
    # NOTE: numerics deviate slightly from PyTorch's default exact GELU.
    return 0.5 * x * (1.0 + jnp.tanh(_SQRT_2_OVER_PI *
                                     (x + 0.044715 * x * x * x)))


def mrconv4d_kernel(x_ref, wx_ref, wj_ref, b_ref, o_ref, *,
                    H, W, K, approximate_gelu, compute_dtype):
    """Processes TB batch elements per grid step.

    x_ref : (TB, C, HW)     input, channels in sublanes, spatial in lanes
    wx_ref: (Cout, C)       BN-folded 1x1-conv weight, `x` half
    wj_ref: (Cout, C)       BN-folded 1x1-conv weight, `x_j` half
    b_ref : (Cout, 1)       BN-folded bias
    o_ref : (TB, Cout, HW)  output
    """
    TB, C, HW = x_ref.shape
    act = _gelu_tanh if approximate_gelu else _gelu_exact

    # Hoisted (1, HW) column-index row for the W-shift boundary masks; it
    # broadcasts over sublanes inside jnp.where (no (C, HW) mask plane).
    col = jax.lax.broadcasted_iota(jnp.int32, (1, HW), 1) % W
    w_masks = [col >= i for i in range(K, W, K)]

    wx = wx_ref[...].astype(compute_dtype)
    wj = wj_ref[...].astype(compute_dtype)
    b = b_ref[...].astype(jnp.float32)

    for tb in range(TB):                                  # static batch block
        x = x_ref[tb].astype(compute_dtype)               # (C, HW)

        # ---- max-relative feature via the min-trick -----------------------
        #   x_j = max(0, max_i (x - shift_i(x))) = x - min(x, min_i shift_i(x))
        # One XLU roll + one VPU min per H-shift; two rolls + select + min per
        # W-shift; a single subtract at the end.
        mn = x

        # Shifts along H: a circular roll by i rows == flat lane roll by i*W.
        for i in range(K, H, K):
            mn = jnp.minimum(mn, pltpu.roll(x, i * W, axis=1))

        # Shifts along W: per-row circular roll by i columns, composed from
        # two flat lane rolls selected by the (1, HW) column-boundary mask.
        for idx, i in enumerate(range(K, W, K)):
            rolled = jnp.where(w_masks[idx],
                               pltpu.roll(x, i, axis=1),
                               pltpu.roll(x, HW - (W - i), axis=1))
            mn = jnp.minimum(mn, rolled)

        x_j = x - mn                                       # (C, HW), >= 0

        # ---- 1x1 conv (+ folded eval-mode BN) + GELU -----------------------
        # cat([x, x_j], channel) @ W^T == Wx @ x + Wj @ x_j (weight pre-split);
        # N = H*W stays lane-dense.  MXU is non-binding at these sizes, so the
        # split two-dot form is kept (no concat scratch round-trip).
        y = (jnp.dot(wx, x, preferred_element_type=jnp.float32,
                     precision=jax.lax.Precision.HIGHEST)
             + jnp.dot(wj, x_j, preferred_element_type=jnp.float32,
                       precision=jax.lax.Precision.HIGHEST)
             + b)                                          # (Cout, HW)
        o_ref[tb] = act(y).astype(o_ref.dtype)


def _pick_batch_block(B, max_tb):
    """Largest TB <= max_tb dividing B that still leaves >= 2 grid steps."""
    for tb in range(min(B, max_tb), 0, -1):
        if B % tb == 0 and B // tb >= 2:
            return tb
    # B == 1 (or no divisor): single grid step.
    # TODO(synk): for B == 1 on v7x, a second parallel axis over Cout halves
    # would feed both TensorCores (accepting x_j recompute).
    return 1


@functools.partial(jax.jit,
                   static_argnames=("K", "eps", "approximate_gelu",
                                    "compute_dtype", "max_batch_block"))
def mrconv4d(x, w_conv, b_conv, gamma, beta, mean, var, *, K=2, eps=1e-5,
             approximate_gelu=False, compute_dtype=jnp.float32,
             max_batch_block=8):
    """MRConv4d forward. x: (B, C, H, W) NCHW; returns (B, Cout, H, W).

    compute_dtype=jnp.bfloat16 halves VPU/VMEM cost of the shift loop on
    v6e/v7x (keep f32 on v5e, which has no bf16 VALU).
    """
    B, C, H, W = x.shape
    Cout = w_conv.shape[0]
    HW = H * W

    # Fold eval-mode BatchNorm into the 1x1 conv (pure parameter algebra).
    scale = gamma / jnp.sqrt(var + eps)
    w_eff = w_conv * scale[:, None]                        # (Cout, 2C)
    b_eff = (scale * (b_conv - mean) + beta)[:, None]      # (Cout, 1)
    wx_eff = w_eff[:, :C]
    wj_eff = w_eff[:, C:]

    # NCHW -> (B, C, H*W): identical row-major layout, free reshape in HBM.
    # Lane-dense (unmasked) stores need HW % 128 == 0; other resolutions are
    # still correct but use masked stores.
    x_flat = x.reshape(B, C, HW)

    TB = _pick_batch_block(B, max_batch_block)
    grid = (B // TB,)

    n_h = len(range(K, H, K))
    n_w = len(range(K, W, K))
    cost = pl.CostEstimate(
        flops=int(B * (HW * C * (n_h + 2 * n_w + 1)
                       + 2 * 2 * Cout * C * HW + 8 * Cout * HW)),
        transcendentals=int(B * Cout * HW),
        bytes_accessed=int(4 * (B * C * HW + B * Cout * HW
                                + 2 * Cout * C + Cout)),
    )

    out = pl.pallas_call(
        functools.partial(mrconv4d_kernel, H=H, W=W, K=K,
                          approximate_gelu=approximate_gelu,
                          compute_dtype=compute_dtype),
        out_shape=jax.ShapeDtypeStruct((B, Cout, HW), x.dtype),
        grid_spec=pltpu.PrefetchScalarGridSpec(
            num_scalar_prefetch=0,
            grid=grid,                      # >= 2 parallel steps when B >= 2
            in_specs=[
                pl.BlockSpec((TB, C, HW), lambda g: (g, 0, 0)),   # x
                pl.BlockSpec((Cout, C), lambda g: (0, 0)),        # Wx (folded)
                pl.BlockSpec((Cout, C), lambda g: (0, 0)),        # Wj (folded)
                pl.BlockSpec((Cout, 1), lambda g: (0, 0)),        # bias
            ],
            out_specs=pl.BlockSpec((TB, Cout, HW), lambda g: (g, 0, 0)),
        ),
        compiler_params=pltpu.CompilerParams(
            dimension_semantics=("parallel",),
            # Above the 16 MiB (v5e) / 32 MiB (v6e, v7x) scoped defaults,
            # below v7x's 64 MiB physical VMEM.
            vmem_limit_bytes=48 * 1024 * 1024),
        cost_estimate=cost,
    )(x_flat, wx_eff, wj_eff, b_eff)

    return out.reshape(B, Cout, H, W)


def _reference(x, w_conv, b_conv, gamma, beta, mean, var, *, K=2, eps=1e-5):
    """Pure-JAX mirror of the PyTorch MRConv4d forward (eval-mode BN), NCHW."""
    B, C, H, W = x.shape
    x_j = jnp.zeros_like(x)
    for i in range(K, H, K):
        shifted = jnp.concatenate([x[:, :, -i:, :], x[:, :, :-i, :]], axis=2)
        x_j = jnp.maximum(x_j, x - shifted)
    for i in range(K, W, K):
        shifted = jnp.concatenate([x[:, :, :, -i:], x[:, :, :, :-i]], axis=3)
        x_j = jnp.maximum(x_j, x - shifted)
    xcat = jnp.concatenate([x, x_j], axis=1)               # (B, 2C, H, W)
    y = jnp.einsum("oc,bchw->bohw", w_conv, xcat,
                   precision=jax.lax.Precision.HIGHEST)
    y = y + b_conv[None, :, None, None]
    scale = (gamma / jnp.sqrt(var + eps))[None, :, None, None]
    y = (y - mean[None, :, None, None]) * scale + beta[None, :, None, None]
    return _gelu_exact(y)


if __name__ == "__main__":
    # Small shapes consistent with MobileViG usage: MRConv4d(C, 2*C, K=2).
    # (nn.BatchNorm2d(in_channels * 2) in the module implies Cout == 2*C.)
    B, C, H, W, K = 2, 4, 16, 16, 2
    Cout = 2 * C

    key = jax.random.PRNGKey(0)
    ks = jax.random.split(key, 7)

    x = jax.random.normal(ks[0], (B, C, H, W), jnp.float32)
    w_conv = 0.2 * jax.random.normal(ks[1], (Cout, 2 * C), jnp.float32)
    b_conv = 0.1 * jax.random.normal(ks[2], (Cout,), jnp.float32)
    gamma = 1.0 + 0.1 * jax.random.normal(ks[3], (Cout,), jnp.float32)
    beta = 0.1 * jax.random.normal(ks[4], (Cout,), jnp.float32)
    mean = 0.1 * jax.random.normal(ks[5], (Cout,), jnp.float32)
    var = 1.0 + 0.1 * jax.random.uniform(ks[6], (Cout,), jnp.float32)

    out = mrconv4d(x, w_conv, b_conv, gamma, beta, mean, var, K=K)
    out = jax.block_until_ready(out)

    ref = _reference(x, w_conv, b_conv, gamma, beta, mean, var, K=K)
    np.testing.assert_allclose(np.asarray(out), np.asarray(ref),
                               rtol=1e-4, atol=1e-4)
    print("KERNEL_OK")
</pallas_src>

<mosaic_0001>
module attributes {stable_mosaic.version = 11 : i64} {
  func.func @mrconv4d_kernel(%arg0: i32, %arg1: memref<1x4x256xf32, #tpu.memory_space<vmem>>, %arg2: memref<8x4xf32, #tpu.memory_space<vmem>>, %arg3: memref<8x4xf32, #tpu.memory_space<vmem>>, %arg4: memref<8x1xf32, #tpu.memory_space<vmem>>, %arg5: memref<1x8x256xf32, #tpu.memory_space<vmem>>) attributes {dimension_semantics = [#tpu.dimension_semantics<parallel>], iteration_bounds = array<i64: 2>, scalar_prefetch = 0 : i64, scratch_operands = 0 : i64, tpu.core_type = #tpu.core_type<tc>, window_params = [{transform_indices = @transform_0, window_bounds = array<i64: 1, 4, 256>}, {pipeline_mode = #tpu.pipeline_mode<synchronous>, transform_indices = @transform_1, window_bounds = array<i64: 8, 4>}, {pipeline_mode = #tpu.pipeline_mode<synchronous>, transform_indices = @transform_2, window_bounds = array<i64: 8, 4>}, {pipeline_mode = #tpu.pipeline_mode<synchronous>, transform_indices = @transform_3, window_bounds = array<i64: 8, 1>}, {transform_indices = @transform_4, window_bounds = array<i64: 1, 8, 256>}]} {
    %0 = tpu.iota {dimensions = array<i32: 1>} : vector<1x256xi32>
    %c16_i32 = arith.constant 16 : i32
    %c0_i32 = arith.constant 0 : i32
    %1 = arith.cmpi eq, %c16_i32, %c0_i32 : i32
    %c1_i32 = arith.constant 1 : i32
    %2 = arith.select %1, %c1_i32, %c16_i32 : i32
    %3 = vector.broadcast %2 : i32 to vector<1x256xi32>
    %4 = arith.remsi %0, %3 : vector<1x256xi32>
    %c0_i32_0 = arith.constant 0 : i32
    %5 = vector.broadcast %c0_i32_0 : i32 to vector<1x256xi32>
    %6 = arith.cmpi ne, %4, %5 : vector<1x256xi32>
    %c0_i32_1 = arith.constant 0 : i32
    %7 = vector.broadcast %c0_i32_1 : i32 to vector<1x256xi32>
    %8 = arith.cmpi slt, %4, %7 : vector<1x256xi32>
    %c0_i32_2 = arith.constant 0 : i32
    %9 = arith.cmpi slt, %2, %c0_i32_2 : i32
    %10 = vector.broadcast %9 : i1 to vector<1x256xi1>
    %11 = vector.broadcast %10 : vector<1x256xi1> to vector<1x256xi1>
    %12 = arith.xori %8, %11 : vector<1x256xi1>
    %13 = arith.andi %12, %6 : vector<1x256xi1>
    %14 = vector.broadcast %2 : i32 to vector<1x256xi32>
    %15 = arith.addi %4, %14 : vector<1x256xi32>
    %16 = arith.select %13, %15, %4 : vector<1x256xi1>, vector<1x256xi32>
    %c2_i32 = arith.constant 2 : i32
    %17 = vector.broadcast %c2_i32 : i32 to vector<1x256xi32>
    %18 = arith.cmpi sge, %16, %17 : vector<1x256xi32>
    %c4_i32 = arith.constant 4 : i32
    %19 = vector.broadcast %c4_i32 : i32 to vector<1x256xi32>
    %20 = arith.cmpi sge, %16, %19 : vector<1x256xi32>
    %c6_i32 = arith.constant 6 : i32
    %21 = vector.broadcast %c6_i32 : i32 to vector<1x256xi32>
    %22 = arith.cmpi sge, %16, %21 : vector<1x256xi32>
    %c8_i32 = arith.constant 8 : i32
    %23 = vector.broadcast %c8_i32 : i32 to vector<1x256xi32>
    %24 = arith.cmpi sge, %16, %23 : vector<1x256xi32>
    %c10_i32 = arith.constant 10 : i32
    %25 = vector.broadcast %c10_i32 : i32 to vector<1x256xi32>
    %26 = arith.cmpi sge, %16, %25 : vector<1x256xi32>
    %c12_i32 = arith.constant 12 : i32
    %27 = vector.broadcast %c12_i32 : i32 to vector<1x256xi32>
    %28 = arith.cmpi sge, %16, %27 : vector<1x256xi32>
    %c14_i32 = arith.constant 14 : i32
    %29 = vector.broadcast %c14_i32 : i32 to vector<1x256xi32>
    %30 = arith.cmpi sge, %16, %29 : vector<1x256xi32>
    %c0 = arith.constant 0 : index
    %c0_3 = arith.constant 0 : index
    %31 = vector.load %arg2[%c0, %c0_3] : memref<8x4xf32, #tpu.memory_space<vmem>>, vector<8x4xf32>
    %c0_4 = arith.constant 0 : index
    %c0_5 = arith.constant 0 : index
    %32 = vector.load %arg3[%c0_4, %c0_5] : memref<8x4xf32, #tpu.memory_space<vmem>>, vector<8x4xf32>
    %c0_6 = arith.constant 0 : index
    %c0_7 = arith.constant 0 : index
    %33 = vector.load %arg4[%c0_6, %c0_7] : memref<8x1xf32, #tpu.memory_space<vmem>>, vector<8x1xf32>
    %c0_8 = arith.constant 0 : index
    %c0_9 = arith.constant 0 : index
    %c0_10 = arith.constant 0 : index
    %34 = vector.load %arg1[%c0_8, %c0_9, %c0_10] : memref<1x4x256xf32, #tpu.memory_space<vmem>>, vector<1x4x256xf32>
    %35 = vector.shape_cast %34 : vector<1x4x256xf32> to vector<4x256xf32>
    %c32_i32 = arith.constant 32 : i32
    %36 = tpu.dynamic_rotate %35 by %c32_i32 dim 1 : vector<4x256xf32>, i32 -> vector<4x256xf32>
    %37 = arith.minimumf %35, %36 : vector<4x256xf32>
    %c64_i32 = arith.constant 64 : i32
    %38 = tpu.dynamic_rotate %35 by %c64_i32 dim 1 : vector<4x256xf32>, i32 -> vector<4x256xf32>
    %39 = arith.minimumf %37, %38 : vector<4x256xf32>
    %c96_i32 = arith.constant 96 : i32
    %40 = tpu.dynamic_rotate %35 by %c96_i32 dim 1 : vector<4x256xf32>, i32 -> vector<4x256xf32>
    %41 = arith.minimumf %39, %40 : vector<4x256xf32>
    %c128_i32 = arith.constant 128 : i32
    %42 = tpu.dynamic_rotate %35 by %c128_i32 dim 1 : vector<4x256xf32>, i32 -> vector<4x256xf32>
    %43 = arith.minimumf %41, %42 : vector<4x256xf32>
    %c160_i32 = arith.constant 160 : i32
    %44 = tpu.dynamic_rotate %35 by %c160_i32 dim 1 : vector<4x256xf32>, i32 -> vector<4x256xf32>
    %45 = arith.minimumf %43, %44 : vector<4x256xf32>
    %c192_i32 = arith.constant 192 : i32
    %46 = tpu.dynamic_rotate %35 by %c192_i32 dim 1 : vector<4x256xf32>, i32 -> vector<4x256xf32>
    %47 = arith.minimumf %45, %46 : vector<4x256xf32>
    %c224_i32 = arith.constant 224 : i32
    %48 = tpu.dynamic_rotate %35 by %c224_i32 dim 1 : vector<4x256xf32>, i32 -> vector<4x256xf32>
    %49 = arith.minimumf %47, %48 : vector<4x256xf32>
    %c2_i32_11 = arith.constant 2 : i32
    %50 = tpu.dynamic_rotate %35 by %c2_i32_11 dim 1 : vector<4x256xf32>, i32 -> vector<4x256xf32>
    %c242_i32 = arith.constant 242 : i32
    %51 = tpu.dynamic_rotate %35 by %c242_i32 dim 1 : vector<4x256xf32>, i32 -> vector<4x256xf32>
    %52 = vector.shape_cast %18 : vector<1x256xi1> to vector<1x256xi1>
    %53 = vector.broadcast %52 : vector<1x256xi1> to vector<4x256xi1>
    %54 = arith.select %53, %50, %51 : vector<4x256xi1>, vector<4x256xf32>
    %55 = arith.minimumf %49, %54 : vector<4x256xf32>
    %c4_i32_12 = arith.constant 4 : i32
    %56 = tpu.dynamic_rotate %35 by %c4_i32_12 dim 1 : vector<4x256xf32>, i32 -> vector<4x256xf32>
    %c244_i32 = arith.constant 244 : i32
    %57 = tpu.dynamic_rotate %35 by %c244_i32 dim 1 : vector<4x256xf32>, i32 -> vector<4x256xf32>
    %58 = vector.shape_cast %20 : vector<1x256xi1> to vector<1x256xi1>
    %59 = vector.broadcast %58 : vector<1x256xi1> to vector<4x256xi1>
    %60 = arith.select %59, %56, %57 : vector<4x256xi1>, vector<4x256xf32>
    %61 = arith.minimumf %55, %60 : vector<4x256xf32>
    %c6_i32_13 = arith.constant 6 : i32
    %62 = tpu.dynamic_rotate %35 by %c6_i32_13 dim 1 : vector<4x256xf32>, i32 -> vector<4x256xf32>
    %c246_i32 = arith.constant 246 : i32
    %63 = tpu.dynamic_rotate %35 by %c246_i32 dim 1 : vector<4x256xf32>, i32 -> vector<4x256xf32>
    %64 = vector.shape_cast %22 : vector<1x256xi1> to vector<1x256xi1>
    %65 = vector.broadcast %64 : vector<1x256xi1> to vector<4x256xi1>
    %66 = arith.select %65, %62, %63 : vector<4x256xi1>, vector<4x256xf32>
    %67 = arith.minimumf %61, %66 : vector<4x256xf32>
    %c8_i32_14 = arith.constant 8 : i32
    %68 = tpu.dynamic_rotate %35 by %c8_i32_14 dim 1 : vector<4x256xf32>, i32 -> vector<4x256xf32>
    %c248_i32 = arith.constant 248 : i32
    %69 = tpu.dynamic_rotate %35 by %c248_i32 dim 1 : vector<4x256xf32>, i32 -> vector<4x256xf32>
    %70 = vector.shape_cast %24 : vector<1x256xi1> to vector<1x256xi1>
    %71 = vector.broadcast %70 : vector<1x256xi1> to vector<4x256xi1>
    %72 = arith.select %71, %68, %69 : vector<4x256xi1>, vector<4x256xf32>
    %73 = arith.minimumf %67, %72 : vector<4x256xf32>
    %c10_i32_15 = arith.constant 10 : i32
    %74 = tpu.dynamic_rotate %35 by %c10_i32_15 dim 1 : vector<4x256xf32>, i32 -> vector<4x256xf32>
    %c250_i32 = arith.constant 250 : i32
    %75 = tpu.dynamic_rotate %35 by %c250_i32 dim 1 : vector<4x256xf32>, i32 -> vector<4x256xf32>
    %76 = vector.shape_cast %26 : vector<1x256xi1> to vector<1x256xi1>
    %77 = vector.broadcast %76 : vector<1x256xi1> to vector<4x256xi1>
    %78 = arith.select %77, %74, %75 : vector<4x256xi1>, vector<4x256xf32>
    %79 = arith.minimumf %73, %78 : vector<4x256xf32>
    %c12_i32_16 = arith.constant 12 : i32
    %80 = tpu.dynamic_rotate %35 by %c12_i32_16 dim 1 : vector<4x256xf32>, i32 -> vector<4x256xf32>
    %c252_i32 = arith.constant 252 : i32
    %81 = tpu.dynamic_rotate %35 by %c252_i32 dim 1 : vector<4x256xf32>, i32 -> vector<4x256xf32>
    %82 = vector.shape_cast %28 : vector<1x256xi1> to vector<1x256xi1>
    %83 = vector.broadcast %82 : vector<1x256xi1> to vector<4x256xi1>
    %84 = arith.select %83, %80, %81 : vector<4x256xi1>, vector<4x256xf32>
    %85 = arith.minimumf %79, %84 : vector<4x256xf32>
    %c14_i32_17 = arith.constant 14 : i32
    %86 = tpu.dynamic_rotate %35 by %c14_i32_17 dim 1 : vector<4x256xf32>, i32 -> vector<4x256xf32>
    %c254_i32 = arith.constant 254 : i32
    %87 = tpu.dynamic_rotate %35 by %c254_i32 dim 1 : vector<4x256xf32>, i32 -> vector<4x256xf32>
    %88 = vector.shape_cast %30 : vector<1x256xi1> to vector<1x256xi1>
    %89 = vector.broadcast %88 : vector<1x256xi1> to vector<4x256xi1>
    %90 = arith.select %89, %86, %87 : vector<4x256xi1>, vector<4x256xf32>
    %91 = arith.minimumf %85, %90 : vector<4x256xf32>
    %92 = arith.subf %35, %91 : vector<4x256xf32>
    %cst = arith.constant dense<0.000000e+00> : vector<8x256xf32>
    %93 = tpu.matmul %31, %35, %cst {dimension_numbers = #tpu.dot_dimension_numbers<[1], [0], [0], [1], [0, 0, 1, 1], [], []>, precision = #tpu.contract_precision<fp32>} : vector<8x4xf32>, vector<4x256xf32>, vector<8x256xf32> -> vector<8x256xf32>
    %cst_18 = arith.constant dense<0.000000e+00> : vector<8x256xf32>
    %94 = tpu.matmul %32, %92, %cst_18 {dimension_numbers = #tpu.dot_dimension_numbers<[1], [0], [0], [1], [0, 0, 1, 1], [], []>, precision = #tpu.contract_precision<fp32>} : vector<8x4xf32>, vector<4x256xf32>, vector<8x256xf32> -> vector<8x256xf32>
    %95 = arith.addf %93, %94 : vector<8x256xf32>
    %96 = vector.broadcast %33 : vector<8x1xf32> to vector<8x256xf32>
    %97 = arith.addf %95, %96 : vector<8x256xf32>
    %cst_19 = arith.constant 5.000000e-01 : f32
    %98 = vector.broadcast %cst_19 : f32 to vector<8x256xf32>
    %99 = arith.mulf %98, %97 : vector<8x256xf32>
    %cst_20 = arith.constant 0.707106769 : f32
    %100 = vector.broadcast %cst_20 : f32 to vector<8x256xf32>
    %101 = arith.mulf %97, %100 : vector<8x256xf32>
    %102 = math.erf %101 : vector<8x256xf32>
    %cst_21 = arith.constant 1.000000e+00 : f32
    %103 = vector.broadcast %cst_21 : f32 to vector<8x256xf32>
    %104 = arith.addf %103, %102 : vector<8x256xf32>
    %105 = arith.mulf %99, %104 : vector<8x256xf32>
    %c0_22 = arith.constant 0 : index
    %c0_23 = arith.constant 0 : index
    %c0_24 = arith.constant 0 : index
    %106 = vector.load %arg5[%c0_22, %c0_23, %c0_24] : memref<1x8x256xf32, #tpu.memory_space<vmem>>, vector<1x8x256xf32>
    %107 = vector.shape_cast %106 : vector<1x8x256xf32> to vector<8x256xf32>
    %108 = vector.shape_cast %105 : vector<8x256xf32> to vector<1x8x256xf32>
    tpu.vector_store %arg5[%c0_22, %c0_23, %c0_24], %108 {strides = array<i32>} : memref<1x8x256xf32, #tpu.memory_space<vmem>>, vector<1x8x256xf32>,
    return
  }
  func.func @transform_0(%arg0: i32) -> (i32, i32, i32) {
    %c0_i32 = arith.constant 0 : i32
    %c0_i32_0 = arith.constant 0 : i32
    %c0_i32_1 = arith.constant 0 : i32
    return %arg0, %c0_i32, %c0_i32_0 : i32, i32, i32
  }
  func.func @transform_1(%arg0: i32) -> (i32, i32) {
    %c0_i32 = arith.constant 0 : i32
    %c0_i32_0 = arith.constant 0 : i32
    %c0_i32_1 = arith.constant 0 : i32
    return %c0_i32, %c0_i32_0 : i32, i32
  }
  func.func @transform_2(%arg0: i32) -> (i32, i32) {
    %c0_i32 = arith.constant 0 : i32
    %c0_i32_0 = arith.constant 0 : i32
    %c0_i32_1 = arith.constant 0 : i32
    return %c0_i32, %c0_i32_0 : i32, i32
  }
  func.func @transform_3(%arg0: i32) -> (i32, i32) {
    %c0_i32 = arith.constant 0 : i32
    %c0_i32_0 = arith.constant 0 : i32
    %c0_i32_1 = arith.constant 0 : i32
    return %c0_i32, %c0_i32_0 : i32, i32
  }
  func.func @transform_4(%arg0: i32) -> (i32, i32, i32) {
    %c0_i32 = arith.constant 0 : i32
    %c0_i32_0 = arith.constant 0 : i32
    %c0_i32_1 = arith.constant 0 : i32
    return %arg0, %c0_i32, %c0_i32_0 : i32, i32, i32
  }
}

</mosaic_0001>

<bundles_post_ra>
// kernel: mrconv4d.1
= control target key start
LH: loop header
LB: loop body
LE: loop exit
PB: predicated region body
PF: predicated region fallthrough
CT: control target
= control target key end

     0   :  { %s1466_s15 = smov 0   ;;  %s1736_s0 = inlined_call_operand.vmem [shape: f32[2,4,256], index: 0, kind: input, shape index: {}]   ;;  %s1737_s1 = inlined_call_operand.vmem [shape: f32[8,4], index: 1, kind: input, shape index: {}]   ;;  %s1738_s2 = inlined_call_operand.vmem [shape: f32[8,4], index: 2, kind: input, shape index: {}]   ;;  %s1739_s3 = inlined_call_operand.vmem [shape: f32[8,1], index: 3, kind: input, shape index: {}]   ;;  %s1740_s4 = inlined_call_operand.vmem [shape: f32[2,8,256], index: 4, kind: output, shape index: {}]  }
   0x1 LB: > { %s1368_s16 = sadd.s32 4294967295, %s1421_s15   ;;  %p1372_p0 = scmp.ge.s32.totalorder %s1421_s15, 1  ;;  %s1421_s15 = sphi %s1466_s15, %s14_s15  }
   0x2   : > { %p162_p1 = scmp.lt.s32.totalorder %s1421_s15, 3 }
   0x4   : > { %p163_p2 = pnand %p1372_p0, %p162_p1 }
   0x5   : > { %p188_p3 = scmp.lt.s32.totalorder (!%p163_p2), %s1368_s16, 1  ;;  %s1423_s21 = smov (!%p163_p2), 32  }
   0x6   : > { %166 = sbr.rel (%p163_p2) target bundleno = 553 (0x229), region = 36  ;;  %s1424_s22 = smov (!%p163_p2), 64  }
   0x7   : > { %s1425_s23 = smov (!%p163_p2), 96   ;;  %s1426_s24 = smov (!%p163_p2), 2  }
   0x8   : > { %s1427_s25 = smov (!%p163_p2), 114   ;;  %s1428_s26 = smov (!%p163_p2), 4  }
   0x9   : > { %s1429_s27 = smov (!%p163_p2), 116   ;;  %s1430_s28 = smov (!%p163_p2), 6  }
   0xa   : > { %s1431_s29 = smov (!%p163_p2), 118   ;;  %s1432_s30 = smov (!%p163_p2), 8  }
   0xb   : > { %s1742_s16 = smov (!%p188_p3, %s1368_s16), 1  ;;  %s1433_s5 = smov 120   ;;  %v198_v31 = vlaneseq  ;;  %vm259_vm2 = vcmask 1043456  }
   0xc   : > { %s1381_s17 = sshll.u32 %s1742_s16, 3  ;;  %s1434_s6 = smov 10  }
   0xd   : > { %s192_s20 = scalar_lea.vmem %s1736_s0, %s1381_s17  ;;  %v1502_v34 = vand.u32 127, %v198_v31  ;;  %s1435_s7 = smov 122  }
   0xe   : > { %v1480_v0 = vld [vmem:[%s192_s20] sm:$0xff]  ;;  %s1436_s8 = smov 12   ;;  %s1437_s9 = smov 124  }
   0xf   : > { %244 = vst [vmem:[#allocation1] ss:$2 sm:$0xff] %v1480_v0  ;;  %vm253_vm0 = vcmp.lt.s32.totalorder %v1502_v34, 32  ;;  %vm290_vm1 = vcmp.lt.s32.totalorder %v1502_v34, 96  ;;  %vm272_vm3 = vcmp.lt.s32.totalorder %v1502_v34, 64  ;;  %s1438_s10 = smov 14  }
  0x10   : > { %s1439_s11 = smov 126   ;;  %vm366_vm4 = vcmp.lt.s32.totalorder %v1502_v34, 2  ;;  %vm378_vm5 = vcmp.lt.s32.totalorder %v1502_v34, 114  ;;  %vm402_vm7 = vcmp.lt.s32.totalorder %v1502_v34, 4  ;;  %vm414_vm8 = vcmp.lt.s32.totalorder %v1502_v34, 116  ;;  %s1382_s20 = sshll.u32 %s1742_s16, 4 }
  0x11   : > { %vm438_vm12 = vcmp.lt.s32.totalorder %v1502_v34, 6  ;;  %vm450_vm13 = vcmp.lt.s32.totalorder %v1502_v34, 118  ;;  %vm474_vm15 = vcmp.lt.s32.totalorder %v1502_v34, 8 }
  0x16   : > { %v245_v1 = vld.sshfl [vmem:[#allocation1] sm:$0xff pattern:$0x75316420]  ;;  %v246_v2 = vld.sshfl [vmem:[#allocation1 + $0x8] sm:$0xff pattern:$0x75316420] }
  0x17   : > { %249 = vrot.lane.b32.xlu0 %v245_v1, %s1423_s21  ;;  %263 = vst [vmem:[#allocation1] ss:$2 sm:$0xff] %v1480_v0 }
  0x1e   : > { %v264_v3 = vld.sshfl [vmem:[#allocation1] sm:$0xff pattern:$0x75316420]  ;;  %v265_v4 = vld.sshfl [vmem:[#allocation1 + $0x8] sm:$0xff pattern:$0x75316420] }
  0x1f   : > { %268 = vrot.lane.b32.xlu1 %v264_v3, %s1424_s22  ;;  %251 = vrot.lane.b32.xlu0 %v246_v2, %s1423_s21  ;;  %281 = vst [vmem:[#allocation1] ss:$2 sm:$0xff] %v1480_v0 }
  0x26   : > { %v282_v5 = vld.sshfl [vmem:[#allocation1] sm:$0xff pattern:$0x75316420]  ;;  %v283_v6 = vld.sshfl [vmem:[#allocation1 + $0x8] sm:$0xff pattern:$0x75316420] }
  0x27   : > { %270 = vrot.lane.b32.xlu1 %v265_v4, %s1424_s22  ;;  %299 = vst [vmem:[#allocation1] ss:$2 sm:$0xff] %v1480_v0  ;;  %286 = vrot.lane.b32.xlu2 %v282_v5, %s1425_s23 }
  0x2e   : > { %v1486_v7 = vld.sshfl [vmem:[#allocation1] sm:$0xff pattern:$0x75316420]  ;;  %v1488_v8 = vld.sshfl [vmem:[#allocation1 + $0x8] sm:$0xff pattern:$0x75316420] }
  0x2f   : > { %306 = vst [vmem:[#allocation1] ss:$2 sm:$0xff] %v1480_v0  ;;  %288 = vrot.lane.b32.xlu2 %v283_v6, %s1425_s23  ;;  %v302_v60 = vrot.slane %v1486_v7, 4 }
  0x31   : > { %v303_v63 = vsel %vm259_vm2, %v1488_v8, %v302_v60 }
  0x36   : > { %v307_v9 = vld.sshfl [vmem:[#allocation1] sm:$0xff pattern:$0x75316420]  ;;  %v308_v10 = vld.sshfl [vmem:[#allocation1 + $0x8] sm:$0xff pattern:$0x75316420] }
  0x37   : > { %311 = vrot.lane.b32.xlu0 %v307_v9, %s1423_s21  ;;  %313 = vrot.lane.b32.xlu1 %v308_v10, %s1423_s21  ;;  %323 = vst [vmem:[#allocation1] ss:$2 sm:$0xff] %v1480_v0 }
  0x3e   : > { %v325_v11 = vld.sshfl [vmem:[#allocation1 + $0x8] sm:$0xff pattern:$0x75316420]  ;;  %v324_v12 = vld.sshfl [vmem:[#allocation1] sm:$0xff pattern:$0x75316420] }
  0x3f   : > { %330 = vrot.lane.b32.xlu0 %v325_v11, %s1424_s22  ;;  %340 = vst [vmem:[#allocation1] ss:$2 sm:$0xff] %v1480_v0  ;;  %328 = vrot.lane.b32.xlu2 %v324_v12, %s1424_s22 }
  0x46   : > { %v341_v13 = vld.sshfl [vmem:[#allocation1] sm:$0xff pattern:$0x75316420]  ;;  %v342_v14 = vld.sshfl [vmem:[#allocation1 + $0x8] sm:$0xff pattern:$0x75316420] }
  0x47   : > { %345 = vrot.lane.b32.xlu1 %v341_v13, %s1425_s23  ;;  %357 = vst [vmem:[#allocation1] ss:$2 sm:$0xff] %v1480_v0  ;;  %347 = vrot.lane.b32.xlu2 %v342_v14, %s1425_s23  ;;  %s197_s23 = scalar_lea.vmem %s1740_s4, %s1382_s20 }
  0x4e   : > { %v358_v15 = vld.sshfl [vmem:[#allocation1] sm:$0xff pattern:$0x75316420]  ;;  %v359_v16 = vld.sshfl [vmem:[#allocation1 + $0x8] sm:$0xff pattern:$0x75316420] }
  0x4f   : > { %362 = vrot.lane.b32.xlu0 %v358_v15, %s1426_s24  ;;  %364 = vrot.lane.b32.xlu1 %v359_v16, %s1426_s24  ;;  %369 = vst [vmem:[#allocation1] ss:$2 sm:$0xff] %v1480_v0 }
  0x56   : > { %v371_v17 = vld.sshfl [vmem:[#allocation1 + $0x8] sm:$0xff pattern:$0x75316420]  ;;  %v370_v18 = vld.sshfl [vmem:[#allocation1] sm:$0xff pattern:$0x75316420] }
  0x57   : > { %376 = vrot.lane.b32.xlu0 %v371_v17, %s1427_s25  ;;  %393 = vst [vmem:[#allocation1] ss:$2 sm:$0xff] %v1480_v0  ;;  %374 = vrot.lane.b32.xlu2 %v370_v18, %s1427_s25 }
  0x5e   : > { %v394_v19 = vld.sshfl [vmem:[#allocation1] sm:$0xff pattern:$0x75316420]  ;;  %v395_v20 = vld.sshfl [vmem:[#allocation1 + $0x8] sm:$0xff pattern:$0x75316420] }
  0x5f   : > { %398 = vrot.lane.b32.xlu1 %v394_v19, %s1428_s26  ;;  %405 = vst [vmem:[#allocation1] ss:$2 sm:$0xff] %v1480_v0  ;;  %400 = vrot.lane.b32.xlu2 %v395_v20, %s1428_s26 }
  0x66   : > { %v407_v21 = vld.sshfl [vmem:[#allocation1 + $0x8] sm:$0xff pattern:$0x75316420]  ;;  %v406_v22 = vld.sshfl [vmem:[#allocation1] sm:$0xff pattern:$0x75316420] }
  0x67   : > { %412 = vrot.lane.b32.xlu1 %v407_v21, %s1429_s27  ;;  %410 = vrot.lane.b32.xlu0 %v406_v22, %s1429_s27  ;;  %429 = vst [vmem:[#allocation1] ss:$2 sm:$0xff] %v1480_v0 }
  0x6e   : > { %v431_v23 = vld.sshfl [vmem:[#allocation1 + $0x8] sm:$0xff pattern:$0x75316420]  ;;  %v430_v24 = vld.sshfl [vmem:[#allocation1] sm:$0xff pattern:$0x75316420] }
  0x6f   : > { %436 = vrot.lane.b32.xlu0 %v431_v23, %s1430_s28  ;;  %441 = vst [vmem:[#allocation1] ss:$2 sm:$0xff] %v1480_v0  ;;  %434 = vrot.lane.b32.xlu2 %v430_v24, %s1430_s28 }
  0x76   : > { %v442_v25 = vld.sshfl [vmem:[#allocation1] sm:$0xff pattern:$0x75316420]  ;;  %v443_v26 = vld.sshfl [vmem:[#allocation1 + $0x8] sm:$0xff pattern:$0x75316420] }
  0x77   : > { %446 = vrot.lane.b32.xlu1 %v442_v25, %s1431_s29  ;;  %465 = vst [vmem:[#allocation1] ss:$2 sm:$0xff] %v1480_v0  ;;  %448 = vrot.lane.b32.xlu2 %v443_v26, %s1431_s29 }
  0x7e   : > { %v466_v27 = vld.sshfl [vmem:[#allocation1] sm:$0xff pattern:$0x75316420]  ;;  %v467_v28 = vld.sshfl [vmem:[#allocation1 + $0x8] sm:$0xff pattern:$0x75316420] }
  0x7f   : > { %470 = vrot.lane.b32.xlu0 %v466_v27, %s1432_s30  ;;  %472 = vrot.lane.b32.xlu1 %v467_v28, %s1432_s30  ;;  %477 = vst [vmem:[#allocation1] ss:$2 sm:$0xff] %v1480_v0 }
  0x81   : > { %v287_v32 = vpop.permute.xlu2 %286 }
  0x86   : > { %v479_v29 = vld.sshfl [vmem:[#allocation1 + $0x8] sm:$0xff pattern:$0x75316420]  ;;  %v478_v30 = vld.sshfl [vmem:[#allocation1] sm:$0xff pattern:$0x75316420] }
  0x87   : > { %484 = vrot.lane.b32.xlu0 %v479_v29, %s1433_s5  ;;  %501 = vst [vmem:[#allocation1] ss:$2 sm:$0xff] %v1480_v0  ;;  %482 = vrot.lane.b32.xlu2 %v478_v30, %s1433_s5 }
  0x89   : > { %v250_v33 = vpop.permute.xlu0 %249  ;;  %v289_v37 = vpop.permute.xlu2 %288 }
  0x8a   : > { %v291_v38 = vsel %vm290_vm1, %v287_v32, %v289_v37  ;;  %v292_v39 = vsel %vm290_vm1, %v289_v37, %v287_v32 }
  0x8b   : > { %v295_v42 = vrot.slane %v291_v38, 4 }
  0x8d   : > { %v296_v46 = vsel %vm259_vm2, %v292_v39, %v295_v42  ;;  %v200_v39 = vadd.s32 128, %v1502_v34 }
  0x8e   : > { %v502_v35 = vld.sshfl [vmem:[#allocation1] sm:$0xff pattern:$0x75316420]  ;;  %v503_v36 = vld.sshfl [vmem:[#allocation1 + $0x8] sm:$0xff pattern:$0x75316420] }
  0x8f   : > { %506 = vrot.lane.b32.xlu1 %v502_v35, %s1434_s6  ;;  %513 = vst [vmem:[#allocation1] ss:$2 sm:$0xff] %v1480_v0  ;;  %508 = vrot.lane.b32.xlu2 %v503_v36, %s1434_s6  ;;  %v1558_v42 = vand.u32 15, %v200_v39 }
  0x91   : > { %v269_v40 = vpop.permute.xlu1 %268  ;;  %v252_v41 = vpop.permute.xlu0 %251  ;;  %vm226_vm6 = vcmp.ge.s32.totalorder %v1558_v42, 2  ;;  %vm228_vm11 = vcmp.ge.s32.totalorder %v1558_v42, 4  ;;  %vm230_vm14 = vcmp.ge.s32.totalorder %v1558_v42, 6 }
  0x92   : > { %v254_v43 = vsel %vm253_vm0, %v250_v33, %v252_v41  ;;  %v255_v44 = vsel %vm253_vm0, %v252_v41, %v250_v33 }
  0x93   : > { %v258_v45 = vrot.slane %v254_v43, 4 }
  0x95   : > { %v260_v47 = vsel %vm259_vm2, %v255_v44, %v258_v45 }
  0x96   : > { %v515_v48 = vld.sshfl [vmem:[#allocation1 + $0x8] sm:$0xff pattern:$0x75316420]  ;;  %v514_v49 = vld.sshfl [vmem:[#allocation1] sm:$0xff pattern:$0x75316420]  ;;  %v262_v51 = vmin.f32 %v1480_v0, %v260_v47 }
  0x97   : > { %520 = vrot.lane.b32.xlu1 %v515_v48, %s1435_s7  ;;  %518 = vrot.lane.b32.xlu0 %v514_v49, %s1435_s7  ;;  %537 = vst [vmem:[#allocation1] ss:$2 sm:$0xff] %v1480_v0 }
  0x99   : > { %v271_v50 = vpop.permute.xlu1 %270  ;;  %v329_v12 = vpop.permute.xlu2 %328 }
  0x9a   : > { %v273_v52 = vsel %vm272_vm3, %v269_v40, %v271_v50  ;;  %v274_v53 = vsel %vm272_vm3, %v271_v50, %v269_v40 }
  0x9b   : > { %v277_v54 = vrot.slane %v273_v52, 4 }
  0x9d   : > { %v278_v55 = vsel %vm259_vm2, %v274_v53, %v277_v54 }
  0x9e   : > { %v539_v56 = vld.sshfl [vmem:[#allocation1 + $0x8] sm:$0xff pattern:$0x75316420]  ;;  %v538_v57 = vld.sshfl [vmem:[#allocation1] sm:$0xff pattern:$0x75316420]  ;;  %v280_v58 = vmin.f32 %v262_v51, %v278_v55 }
  0x9f   : > { %544 = vrot.lane.b32.xlu0 %v539_v56, %s1436_s8  ;;  %549 = vst [vmem:[#allocation1] ss:$2 sm:$0xff] %v1480_v0  ;;  %542 = vrot.lane.b32.xlu2 %v538_v57, %s1436_s8 }
  0xa0   : > { %v298_v59 = vmin.f32 %v280_v58, %v296_v46  ;;  %v1567_v46 = vand.u32 15, %v1502_v34 }
  0xa1   : > { %v348_v21 = vpop.permute.xlu2 %347 }
  0xa2   : > { %v305_v3 = vmin.f32 %v298_v59, %v303_v63  ;;  %vm225_vm9 = vcmp.ge.s32.totalorder %v1567_v46, 2  ;;  %vm227_vm10 = vcmp.ge.s32.totalorder %v1567_v46, 4 }
  0xa6   : > { %v550_v61 = vld.sshfl [vmem:[#allocation1] sm:$0xff pattern:$0x75316420]  ;;  %v551_v62 = vld.sshfl [vmem:[#allocation1 + $0x8] sm:$0xff pattern:$0x75316420] }
  0xa7   : > { %554 = vrot.lane.b32.xlu1 %v550_v61, %s1437_s9  ;;  %573 = vst [vmem:[#allocation1] ss:$2 sm:$0xff] %v1480_v0  ;;  %556 = vrot.lane.b32.xlu2 %v551_v62, %s1437_s9 }
  0xa9   : > { %v312_v1 = vpop.permute.xlu0 %311  ;;  %v314_v2 = vpop.permute.xlu1 %313 }
  0xaa   : > { %v315_v4 = vsel %vm253_vm0, %v312_v1, %v314_v2  ;;  %v316_v5 = vsel %vm253_vm0, %v314_v2, %v312_v1  ;;  %vm486_vm0 = vcmp.lt.s32.totalorder %v1502_v34, 120 }
  0xab   : > { %v319_v6 = vrot.slane %v316_v5, 4 }
  0xad   : > { %v320_v7 = vsel %vm259_vm2, %v315_v4, %v319_v6 }
  0xae   : > { %v575_v9 = vld.sshfl [vmem:[#allocation1 + $0x8] sm:$0xff pattern:$0x75316420]  ;;  %v574_v10 = vld.sshfl [vmem:[#allocation1] sm:$0xff pattern:$0x75316420]  ;;  %v322_v11 = vmin.f32 %v305_v3, %v320_v7 }
  0xaf   : > { %580 = vrot.lane.b32.xlu1 %v575_v9, %s1438_s10  ;;  %578 = vrot.lane.b32.xlu0 %v574_v10, %s1438_s10  ;;  %585 = vst [vmem:[#allocation1] ss:$2 sm:$0xff] %v1480_v0 }
  0xb1   : > { %v331_v8 = vpop.permute.xlu0 %330  ;;  %v375_v24 = vpop.permute.xlu2 %374 }
  0xb2   : > { %v332_v13 = vsel %vm272_vm3, %v329_v12, %v331_v8  ;;  %v333_v14 = vsel %vm272_vm3, %v331_v8, %v329_v12  ;;  %vm232_vm3 = vcmp.ge.s32.totalorder %v1558_v42, 8 }
  0xb3   : > { %v336_v15 = vrot.slane %v333_v14, 4 }
  0xb5   : > { %v337_v16 = vsel %vm259_vm2, %v332_v13, %v336_v15 }
  0xb6   : > { %v587_v17 = vld.sshfl [vmem:[#allocation1 + $0x8] sm:$0xff pattern:$0x75316420]  ;;  %v1541_v18 = vmin.f32 %v322_v11, %v337_v16  ;;  %v586_v19 = vld.sshfl [vmem:[#allocation1] sm:$0xff pattern:$0x75316420] }
  0xb7   : > { %592 = vrot.lane.b32.xlu0 %v587_v17, %s1439_s11  ;;  %590 = vrot.lane.b32.xlu2 %v586_v19, %s1439_s11 }
  0xb9   : > { %v346_v20 = vpop.permute.xlu1 %345  ;;  %v401_v26 = vpop.permute.xlu2 %400 }
  0xba   : > { %v350_v44 = vsel %vm290_vm1, %v348_v21, %v346_v20  ;;  %v349_v50 = vsel %vm290_vm1, %v346_v20, %v348_v21  ;;  %vm229_vm1 = vcmp.ge.s32.totalorder %v1567_v46, 6 }
  0xbb   : > { %v353_v48 = vrot.slane %v350_v44, 4 }
  0xbd   : > { %v354_v55 = vsel %vm259_vm2, %v349_v50, %v353_v48 }
  0xbe   : > { %v356_v2 = vmin.f32 %v1541_v18, %v354_v55 }
  0xc1   : > { %v363_v22 = vpop.permute.xlu0 %362  ;;  %v365_v23 = vpop.permute.xlu1 %364 }
  0xc2   : > { %v367_v45 = vsel %vm366_vm4, %v363_v22, %v365_v23  ;;  %v368_v52 = vsel %vm366_vm4, %v365_v23, %v363_v22  ;;  %vm510_vm4 = vcmp.lt.s32.totalorder %v1502_v34, 10 }
  0xc9   : > { %v377_v25 = vpop.permute.xlu0 %376  ;;  %v435_v29 = vpop.permute.xlu2 %434 }
  0xca   : > { %v380_v47 = vsel %vm378_vm5, %v377_v25, %v375_v24  ;;  %v379_v53 = vsel %vm378_vm5, %v375_v24, %v377_v25  ;;  %vm522_vm5 = vcmp.lt.s32.totalorder %v1502_v34, 122 }
  0xcb   : > { %v386_v51 = vsel %vm226_vm6, %v367_v45, %v380_v47  ;;  %v385_v60 = vsel %vm225_vm9, %v368_v52, %v379_v53  ;;  %vm546_vm6 = vcmp.lt.s32.totalorder %v1502_v34, 12  ;;  %vm231_vm9 = vcmp.ge.s32.totalorder %v1567_v46, 8 }
  0xcc   : > { %v389_v56 = vrot.slane %v386_v51, 4 }
  0xce   : > { %v390_v4 = vsel %vm259_vm2, %v385_v60, %v389_v56 }
  0xd1   : > { %v399_v27 = vpop.permute.xlu1 %398  ;;  %v1543_v32 = vpop.permute.xlu2 %448 }
  0xd2   : > { %v403_v57 = vsel %vm402_vm7, %v399_v27, %v401_v26  ;;  %v404_v61 = vsel %vm402_vm7, %v401_v26, %v399_v27  ;;  %vm558_vm7 = vcmp.lt.s32.totalorder %v1502_v34, 124 }
  0xd9   : > { %v411_v28 = vpop.permute.xlu0 %410  ;;  %v413_v30 = vpop.permute.xlu1 %412 }
  0xda   : > { %v416_v58 = vsel %vm414_vm8, %v413_v30, %v411_v28  ;;  %v415_v62 = vsel %vm414_vm8, %v411_v28, %v413_v30  ;;  %vm234_vm8 = vcmp.ge.s32.totalorder %v1558_v42, 10 }
  0xdb   : > { %v422_v3 = vsel %vm228_vm11, %v403_v57, %v416_v58  ;;  %v421_v5 = vsel %vm227_vm10, %v404_v61, %v415_v62  ;;  %vm236_vm10 = vcmp.ge.s32.totalorder %v1558_v42, 12  ;;  %vm233_vm11 = vcmp.ge.s32.totalorder %v1567_v46, 10 }
  0xdc   : > { %v425_v10 = vrot.slane %v422_v3, 4 }
  0xde   : > { %v426_v22 = vsel %vm259_vm2, %v421_v5, %v425_v10 }
  0xe1   : > { %v437_v31 = vpop.permute.xlu0 %436  ;;  %v1549_v37 = vpop.permute.xlu2 %482 }
  0xe2   : > { %v439_v63 = vsel %vm438_vm12, %v435_v29, %v437_v31  ;;  %v440_v11 = vsel %vm438_vm12, %v437_v31, %v435_v29  ;;  %v392_v29 = vmin.f32 %v356_v2, %v390_v4  ;;  %vm235_vm12 = vcmp.ge.s32.totalorder %v1567_v46, 12 }
  0xe9   : > { %v447_v33 = vpop.permute.xlu1 %446  ;;  %v1554_v40 = vpop.permute.xlu2 %508 }
  0xea   : > { %v452_v1 = vsel %vm450_vm13, %v1543_v32, %v447_v33  ;;  %v451_v13 = vsel %vm450_vm13, %v447_v33, %v1543_v32  ;;  %vm614_vm13 = vcmask 31744  }
  0xeb   : > { %v458_v6 = vsel %vm230_vm14, %v439_v63, %v452_v1  ;;  %v457_v23 = vsel %vm229_vm1, %v440_v11, %v451_v13  ;;  %vm582_vm14 = vcmp.lt.s32.totalorder %v1502_v34, 14  ;;  %vm237_vm1 = vcmp.ge.s32.totalorder %v1567_v46, 14  ;;  %v239_v11 = vld [vmem:[%s1737_s1] sm:$0xff] }
  0xec   : > { %v461_v16 = vrot.slane %v458_v6, 4  ;;  %v918_v13 = vsel %vm614_vm13, %v239_v11, 0 }
  0xee   : > { %v462_v32 = vsel %vm259_vm2, %v457_v23, %v461_v16 }
  0xf1   : > { %v1545_v35 = vpop.permute.xlu0 %470  ;;  %v1547_v36 = vpop.permute.xlu1 %472 }
  0xf2   : > { %v475_v7 = vsel %vm474_vm15, %v1545_v35, %v1547_v36  ;;  %v476_v17 = vsel %vm474_vm15, %v1547_v36, %v1545_v35  ;;  %v428_v35 = vmin.f32 %v392_v29, %v426_v22  ;;  %vm594_vm15 = vcmp.lt.s32.totalorder %v1502_v34, 126 }
  0xf9   : > { %v1551_v38 = vpop.permute.xlu0 %484  ;;  %v1570_v49 = vpop.permute.xlu2 %542 }
  0xfa   : > { %v488_v9 = vsel %vm486_vm0, %v1551_v38, %v1549_v37  ;;  %v487_v19 = vsel %vm486_vm0, %v1549_v37, %v1551_v38  ;;  %v240_v37 = vld [vmem:[%s1738_s2] sm:$0xff]  ;;  %vm238_vm0 = vcmp.ge.s32.totalorder %v1558_v42, 14 }
  0xfb   : > { %v494_v18 = vsel %vm232_vm3, %v475_v7, %v488_v9  ;;  %v493_v30 = vsel %vm231_vm9, %v476_v17, %v487_v19  ;;  %v616_v48 = vsel %vm614_vm13, %v240_v37, 0  ;;  %v941_v19 = vand.u32 4294901760, %v918_v13 }
  0xfc   : > { %v497_v26 = vrot.slane %v494_v18, 4  ;;  %v1681_v58 = vand.u32 4294901760, %v616_v48 }
  0xfe   : > { %v498_v38 = vsel %vm259_vm2, %v493_v30, %v497_v26  ;;  %v640_v63 = vsub.f32 %v616_v48, %v1681_v58 }
 0x100   : > { %v1688_v2 = vand.u32 4294901760, %v640_v63 }
 0x101   : > { %v1556_v41 = vpop.permute.xlu1 %506  ;;  %v557_v8 = vpop.permute.xlu2 %556 }
 0x102   : > { %v511_v14 = vsel %vm510_vm4, %v1556_v41, %v1554_v40  ;;  %v512_v27 = vsel %vm510_vm4, %v1554_v40, %v1556_v41  ;;  %v642_v3 = vsub.f32 %v640_v63, %v1688_v2 }
 0x104   : > { %v643_v6 = vand.u32 4294901760, %v642_v3 }
 0x109   : > { %v1562_v43 = vpop.permute.xlu0 %518  ;;  %v521_v54 = vpop.permute.xlu1 %520 }
 0x10a   : > { %v524_v15 = vsel %vm522_vm5, %v521_v54, %v1562_v43  ;;  %v523_v28 = vsel %vm522_vm5, %v1562_v43, %v521_v54  ;;  %v464_v43 = vmin.f32 %v428_v35, %v462_v32 }
 0x10b   : > { %v530_v24 = vsel %vm234_vm8, %v511_v14, %v524_v15  ;;  %v529_v36 = vsel %vm233_vm11, %v512_v27, %v523_v28  ;;  %v942_v28 = vsub.f32 %v918_v13, %v941_v19 }
 0x10c   : > { %v533_v33 = vrot.slane %v530_v24, 4  ;;  %v500_v50 = vmin.f32 %v464_v43, %v498_v38  ;;  %v241_v38 = vld [vmem:[%s1739_s3] sm:$0xff] }
 0x10d   : > { %v943_v32 = vand.u32 4294901760, %v942_v28 }
 0x10e   : > { %v534_v47 = vsel %vm259_vm2, %v529_v36, %v533_v33 }
 0x10f   : > { %v536_v56 = vmin.f32 %v500_v50, %v534_v47  ;;  %v944_v36 = vsub.f32 %v942_v28, %v943_v32 }
 0x111   : > { %v545_v59 = vpop.permute.xlu0 %544  ;;  %v591_v45 = vpop.permute.xlu2 %590 }
 0x112   : > { %v547_v20 = vsel %vm546_vm6, %v1570_v49, %v545_v59  ;;  %v548_v39 = vsel %vm546_vm6, %v545_v59, %v1570_v49 }
 0x119   : > { %v555_v12 = vpop.permute.xlu1 %554 }
 0x11a   : > { %v560_v21 = vsel %vm558_vm7, %v557_v8, %v555_v12  ;;  %v559_v40 = vsel %vm558_vm7, %v555_v12, %v557_v8 }
 0x11b   : > { %v566_v31 = vsel %vm236_vm10, %v547_v20, %v560_v21  ;;  %v565_v49 = vsel %vm235_vm12, %v548_v39, %v559_v40  ;;  %v1440_v39 = vmov 0   ;;  %v945_v40 = vand.u32 4294901760, %v944_v36 }
 0x11c   : > { %v569_v41 = vrot.slane %v566_v31, 4  ;;  %1409 = vset.pattern.permute.xlu1 %v1440_v39  ;;  %1410 = vset.pattern.permute.xlu0 %v1440_v39 }
 0x11d   : > { %1218 = vperm.xlu1 %1409, %v241_v38  }
 0x11e   : > { %v570_v52 = vsel %vm259_vm2, %v565_v49, %v569_v41 }
 0x11f   : > { %v572_v60 = vmin.f32 %v536_v56, %v570_v52 }
 0x121   : > { %v579_v25 = vpop.permute.xlu0 %578  ;;  %v581_v44 = vpop.permute.xlu1 %580 }
 0x122   : > { %v583_v53 = vsel %vm582_vm14, %v579_v25, %v581_v44  ;;  %v584_v42 = vsel %vm582_vm14, %v581_v44, %v579_v25 }
 0x129   : > { %v593_v51 = vpop.permute.xlu0 %592 }
 0x12a   : > { %v595_v54 = vsel %vm594_vm15, %v591_v45, %v593_v51  ;;  %v596_v55 = vsel %vm594_vm15, %v593_v51, %v591_v45 }
 0x12b   : > { %v602_v57 = vsel %vm238_vm0, %v583_v53, %v596_v55  ;;  %v601_v61 = vsel %vm237_vm1, %v584_v42, %v595_v54 }
 0x12c   : > { %v605_v59 = vrot.slane %v602_v57, 4 }
 0x12e   : > { %v606_v62 = vsel %vm259_vm2, %v601_v61, %v605_v59 }
 0x12f   : > { %v608_v46 = vmin.f32 %v572_v60, %v606_v62 }
 0x131   : > { %v609_v1 = vsub.f32 %v1480_v0, %v608_v46 }
 0x133   : > { %611 = vst [vmem:[#allocation1] ss:$2 sm:$0xff] %v609_v1 }
 0x13a   : > { %v612_v4 = vld.sshfl [vmem:[#allocation1] sm:$0xff pattern:$0x75316420]  ;;  %v613_v5 = vld.sshfl [vmem:[#allocation1 + $0x8] sm:$0xff pattern:$0x75316420] }
 0x13b   : > { %v618_v34 = vsel %vm259_vm2, %v612_v4, 0  ;;  %v620_v7 = vsel %vm259_vm2, %v613_v5, 0  ;;  %914 = vst [vmem:[#allocation1] ss:$2 sm:$0xff] %v1480_v0 }
 0x13c   : > { %v637_v9 = vand.u32 4294901760, %v618_v34  ;;  %v783_v10 = vand.u32 4294901760, %v620_v7 }
 0x13e   : > { %638 = vmatpush.msra.mxu0 %v637_v9  ;;  %714 = vmatpush.msra.mxu3 %v637_v9  ;;  %v664_v8 = vsub.f32 %v618_v34, %v637_v9  ;;  %v810_v12 = vsub.f32 %v620_v7, %v783_v10 }
 0x13f   : > { %644 = vmatmul.f32.vlgmr.msra.gmra.mxu0 %v643_v6  ;;  %718 = vmatmul.f32.vlgmr.msra.gmra.mxu3 %v1688_v2 }
 0x140   : > { %691 = vmatpush.msra.mxu2 %v664_v8  ;;  %v665_v14 = vand.u32 4294901760, %v664_v8  ;;  %v811_v15 = vand.u32 4294901760, %v810_v12 }
 0x141   : > { %694 = vmatmul.f32.vlgmr.msra.gmra.mxu2 %v640_v63 }
 0x142   : > { %784 = vmatpush.msrb.mxu2 %v783_v10  ;;  %740 = vmatpush.msrb.mxu0 %v665_v14  ;;  %v666_v0 = vsub.f32 %v664_v8, %v665_v14  ;;  %v812_v16 = vsub.f32 %v810_v12, %v811_v15  ;;  %v915_v17 = vld.sshfl [vmem:[#allocation1] sm:$0xff pattern:$0x75316420]  ;;  %v916_v18 = vld.sshfl [vmem:[#allocation1 + $0x8] sm:$0xff pattern:$0x75316420] }
 0x143   : > { %v920_v20 = vsel %vm259_vm2, %v915_v17, 0  ;;  %v922_v21 = vsel %vm259_vm2, %v916_v18, 0 }
 0x144   : > { %886 = vmatpush.msra.mxu2 %v811_v15  ;;  %837 = vmatpush.msra.mxu0 %v810_v12  ;;  %v667_v22 = vand.u32 4294901760, %v666_v0  ;;  %v813_v23 = vand.u32 4294901760, %v812_v16  ;;  %v939_v24 = vand.u32 4294901760, %v920_v20  ;;  %v1085_v25 = vand.u32 4294901760, %v922_v21 }
 0x146   : > { %668 = vmatpush.msra.mxu1 %v667_v22  ;;  %814 = vmatpush.msrb.mxu3 %v813_v23  ;;  %v966_v26 = vsub.f32 %v920_v20, %v939_v24  ;;  %v1112_v27 = vsub.f32 %v922_v21, %v1085_v25 }
 0x147   : > { %670 = vmatmul.f32.vlgmr.msra.gmra.mxu1 %v1681_v58  ;;  %742 = vmatmul.f32.vlgmr.msrb.gmra.mxu0 %v1681_v58 }
 0x148   : > { %762 = vmatpush.msrb.mxu1 %v637_v9  ;;  %908 = vmatpush.msra.mxu3 %v783_v10  ;;  %v967_v29 = vand.u32 4294901760, %v966_v26  ;;  %v1113_v30 = vand.u32 4294901760, %v1112_v27 }
 0x149   : > { %790 = vmatmul.f32.vlgmr.msrb.gmra.mxu2 %v643_v6  ;;  %816 = vmatmul.f32.vlgmr.msrb.gmra.mxu3 %v1681_v58 }
 0x14a   : > { %860 = vmatpush.msra.mxu1 %v783_v10  ;;  %993 = vmatpush.msrb.mxu2 %v966_v26  ;;  %v968_v31 = vsub.f32 %v966_v26, %v967_v29  ;;  %v1114_v33 = vsub.f32 %v1112_v27, %v1113_v30 }
 0x14b   : > { %940 = vmatpush.msrb.mxu0 %v939_v24  ;;  %1016 = vmatpush.msrb.mxu3 %v939_v24 }
 0x14c   : > { %v969_v35 = vand.u32 4294901760, %v968_v31  ;;  %v1115_v37 = vand.u32 4294901760, %v1114_v33 }
 0x14f   : > { %764 = vmatmul.f32.vlgmr.msrb.gmra.mxu1 %v1681_v58  ;;  %840 = vmatmul.f32.vlgmr.msra.gmra.mxu0 %v640_v63 }
 0x150   : > { %970 = vmatpush.msrb.mxu1 %v969_v35  ;;  %1042 = vmatpush.msra.mxu0 %v967_v29 }
 0x151   : > { %888 = vmatmul.f32.vlgmr.msra.gmra.mxu2 %v1681_v58  ;;  %910 = vmatmul.f32.vlgmr.msra.gmra.mxu3 %v1681_v58 }
 0x152   : > { %1086 = vmatpush.msra.mxu2 %v1085_v25  ;;  %1116 = vmatpush.msra.mxu3 %v1115_v37 }
 0x157   : > { %864 = vmatmul.f32.vlgmr.msra.gmra.mxu1 %v1688_v2  ;;  %946 = vmatmul.f32.vlgmr.msrb.gmra.mxu0 %v945_v40 }
 0x158   : > { %1064 = vmatpush.msra.mxu1 %v939_v24  ;;  %1139 = vmatpush.msrb.mxu0 %v1112_v27 }
 0x159   : > { %996 = vmatmul.f32.vlgmr.msrb.gmra.mxu2 %v942_v28  ;;  %1020 = vmatmul.f32.vlgmr.msrb.gmra.mxu3 %v943_v32 }
 0x15a   : > { %1188 = vmatpush.msrb.mxu2 %v1113_v30  ;;  %1210 = vmatpush.msrb.mxu3 %v1085_v25 }
 0x15f   : > { %972 = vmatmul.f32.vlgmr.msrb.gmra.mxu1 %v941_v19  ;;  %1044 = vmatmul.f32.vlgmr.msra.gmra.mxu0 %v941_v19 }
 0x160   : > { %1162 = vmatpush.msrb.mxu1 %v1085_v25 }
 0x161   : > { %1092 = vmatmul.f32.vlgmr.msra.gmra.mxu2 %v945_v40  ;;  %1118 = vmatmul.f32.vlgmr.msra.gmra.mxu3 %v941_v19 }
 0x167   : > { %1066 = vmatmul.f32.vlgmr.msra.gmra.mxu1 %v941_v19  ;;  %1142 = vmatmul.f32.vlgmr.msrb.gmra.mxu0 %v942_v28 }
 0x169   : > { %1190 = vmatmul.f32.vlgmr.msrb.gmra.mxu2 %v941_v19  ;;  %1212 = vmatmul.f32.vlgmr.msrb.gmra.mxu3 %v941_v19 }
 0x16f   : > { %1166 = vmatmul.f32.vlgmr.msrb.gmra.mxu1 %v943_v32 }
 0x18f   : > { %v1219_v10 = vpop.permute.xlu1 %1218 }
 0x1bc   : > { %v645_v41 = vpop.f32.mrf.mxu0 }
 0x1c2   : > { %v719_v43 = vpop.f32.mrf.mxu3 }
 0x1c4   : > { %v671_v44 = vpop.f32.mrf.mxu1  ;;  %v695_v45 = vpop.f32.mrf.mxu2 }
 0x1c5   : > { %v743_v47 = vpop.f32.mrf.mxu0  ;;  %v672_v48 = vadd.f32 %v671_v44, %v645_v41 }
 0x1c7   : > { %v696_v51 = vadd.f32 %v695_v45, %v672_v48 }
 0x1c9   : > { %v720_v54 = vadd.f32 %v719_v43, %v696_v51 }
 0x1cb   : > { %v744_v57 = vadd.f32 %v743_v47, %v720_v54 }
 0x1cc   : > { %v765_v50 = vpop.f32.mrf.mxu1  ;;  %v791_v49 = vpop.f32.mrf.mxu2 }
 0x1cd   : > { %v841_v52 = vpop.f32.mrf.mxu0  ;;  %v817_v53 = vpop.f32.mrf.mxu3  ;;  %v766_v60 = vadd.f32 %v765_v50, %v744_v57 }
 0x1ce   : > { %v818_v58 = vadd.f32 %v817_v53, %v791_v49 }
 0x1d0   : > { %v842_v61 = vadd.f32 %v841_v52, %v818_v58 }
 0x1d4   : > { %v865_v55 = vpop.f32.mrf.mxu1  ;;  %v889_v56 = vpop.f32.mrf.mxu2 }
 0x1d5   : > { %v911_v42 = vpop.f32.mrf.mxu3  ;;  %v947_v59 = vpop.f32.mrf.mxu0  ;;  %v866_v62 = vadd.f32 %v865_v55, %v842_v61 }
 0x1d6   : > { %v948_v46 = vadd.f32 %v947_v59, %v766_v60 }
 0x1d7   : > { %v890_v5 = vadd.f32 %v889_v56, %v866_v62 }
 0x1d9   : > { %v912_v7 = vadd.f32 %v911_v42, %v890_v5 }
 0x1dc   : > { %v973_v63 = vpop.f32.mrf.mxu1  ;;  %v997_v1 = vpop.f32.mrf.mxu2 }
 0x1dd   : > { %v974_v2 = vadd.f32 %v973_v63, %v948_v46  ;;  %v1021_v3 = vpop.f32.mrf.mxu3  ;;  %v1045_v4 = vpop.f32.mrf.mxu0 }
 0x1df   : > { %v998_v34 = vadd.f32 %v997_v1, %v974_v2 }
 0x1e1   : > { %v1022_v6 = vadd.f32 %v1021_v3, %v998_v34 }
 0x1e3   : > { %v1046_v9 = vadd.f32 %v1045_v4, %v1022_v6 }
 0x1e4   : > { %v1067_v11 = vpop.f32.mrf.mxu1  ;;  %v1093_v8 = vpop.f32.mrf.mxu2 }
 0x1e5   : > { %v1068_v12 = vadd.f32 %v1067_v11, %v1046_v9  ;;  %v1094_v13 = vadd.f32 %v1093_v8, %v912_v7  ;;  %v1119_v14 = vpop.f32.mrf.mxu3  ;;  %v1143_v16 = vpop.f32.mrf.mxu0 }
 0x1e7   : > { %v1711_v15 = vadd.f32 %v1219_v10, %v1068_v12  ;;  %v1120_v0 = vadd.f32 %v1119_v14, %v1094_v13 }
 0x1e9   : > { %v1714_v17 = vmul.f32 0.70710677, %v1711_v15  ;;  %v1144_v19 = vadd.f32 %v1143_v16, %v1120_v0 }
 0x1eb   : > { %v1227_v18 = vmul.f32 %v1714_v17, %v1714_v17 }
 0x1ec   : > { %v1167_v20 = vpop.f32.mrf.mxu1  ;;  %v1191_v21 = vpop.f32.mrf.mxu2 }
 0x1ed   : > { %v1228_v22 = vmin.f32 %v1227_v18, 16.0  ;;  %v1168_v23 = vadd.f32 %v1167_v20, %v1144_v19  ;;  %v1213_v24 = vpop.f32.mrf.mxu3 }
 0x1ef   : > { %v1229_v25 = vmul.f32 2.1237322e-06, %v1228_v22  ;;  %v1240_v26 = vmul.f32 3.8918573e-05, %v1228_v22  ;;  %v1192_v27 = vadd.f32 %v1191_v21, %v1168_v23  ;;  %v1223_v23 = vmul.f32 0.5, %v1711_v15 }
 0x1f1   : > { %v1230_v28 = vadd.f32 0.00028619796, %v1229_v25  ;;  %v1241_v29 = vadd.f32 0.001143296, %v1240_v26  ;;  %v1214_v30 = vadd.f32 %v1213_v24, %v1192_v27 }
 0x1f3   : > { %v1231_v31 = vmul.f32 %v1230_v28, %v1228_v22  ;;  %v1242_v32 = vmul.f32 %v1241_v29, %v1228_v22  ;;  %v1718_v33 = vadd.f32 %v1219_v10, %v1214_v30 }
 0x1f5   : > { %v1232_v35 = vadd.f32 0.0036580483, %v1231_v31  ;;  %v1243_v36 = vadd.f32 0.014752088, %v1242_v32  ;;  %v1721_v37 = vmul.f32 0.70710677, %v1718_v33 }
 0x1f7   : > { %v1244_v38 = vmul.f32 %v1243_v36, %v1228_v22  ;;  %v1267_v39 = vmul.f32 %v1721_v37, %v1721_v37  ;;  %v1233_v40 = vmul.f32 %v1232_v35, %v1228_v22 }
 0x1f9   : > { %v1245_v41 = vadd.f32 0.112945676, %v1244_v38  ;;  %v1268_v43 = vmin.f32 %v1267_v39, 16.0  ;;  %v1234_v48 = vadd.f32 0.05243302, %v1233_v40  ;;  %v1224_v39 = vmul.f32 0.5, %v1718_v33 }
 0x1fb   : > { %v1246_v44 = vmul.f32 %v1245_v41, %v1228_v22  ;;  %v1269_v45 = vmul.f32 2.1237322e-06, %v1268_v43  ;;  %v1280_v47 = vmul.f32 3.8918573e-05, %v1268_v43  ;;  %v1235_v55 = vmul.f32 %v1234_v48, %v1228_v22 }
 0x1fd   : > { %v1247_v50 = vadd.f32 0.4994258, %v1246_v44  ;;  %v1270_v49 = vadd.f32 0.00028619796, %v1269_v45  ;;  %v1281_v51 = vadd.f32 0.001143296, %v1280_v47 }
 0x1fe   : > { %v1236_v59 = vadd.f32 0.18741608, %v1235_v55 }
 0x1ff   : > { %v1248_v52 = vmul.f32 %v1247_v50, %v1228_v22  ;;  %v1271_v53 = vmul.f32 %v1270_v49, %v1268_v43  ;;  %v1282_v54 = vmul.f32 %v1281_v51, %v1268_v43 }
 0x200   : > { %v1237_v63 = vmul.f32 %v1236_v59, %v1228_v22 }
 0x201   : > { %v1249_v56 = vadd.f32 1.0, %v1248_v52  ;;  %v1283_v57 = vadd.f32 0.014752088, %v1282_v54  ;;  %v1272_v58 = vadd.f32 0.0036580483, %v1271_v53 }
 0x202   : > { %v1238_v34 = vadd.f32 1.1283791, %v1237_v63 }
 0x203   : > { %1411 = vrcp.f32 %v1249_v56  ;;  %v1284_v42 = vmul.f32 %v1283_v57, %v1268_v43  ;;  %v1273_v61 = vmul.f32 %v1272_v58, %v1268_v43  ;;  %v1261_v6 = vand.u32 2147483648, %v1249_v56 }
 0x204   : > { %v1259_v9 = vand.u32 2147483647, %v1249_v56  ;;  %vm1255_vm3 = vweird.f32 %v1249_v56  ;;  %v1239_v13 = vmul.f32 %v1238_v34, %v1714_v17 }
 0x205   : > { %v1285_v60 = vadd.f32 0.112945676, %v1284_v42  ;;  %v1274_v3 = vadd.f32 0.05243302, %v1273_v61  ;;  %v1262_v12 = vor.u32 1.1754944e-38, %v1261_v6 }
 0x206   : > { %vm1260_vm5 = vcmp.eq.f32.partialorder %v1259_v9, 8.507059e+37 }
 0x207   : > { %v1286_v62 = vmul.f32 %v1285_v60, %v1268_v43  ;;  %v1275_v11 = vmul.f32 %v1274_v3, %v1268_v43 }
 0x209   : > { %v1412_v46 = vpop.eup %1411  ;;  %v1287_v2 = vadd.f32 0.4994258, %v1286_v62  ;;  %v1276_v16 = vadd.f32 0.18741608, %v1275_v11 }
 0x20a   : > { %v1251_v1 = vmul.f32 %v1412_v46, %v1249_v56  ;;  %vm1256_vm2 = vweird.f32 %v1412_v46 }
 0x20b   : > { %v1288_v5 = vmul.f32 %v1287_v2, %v1268_v43  ;;  %vm1257_vm4 = vmor %vm1255_vm3, %vm1256_vm2  ;;  %v1277_v21 = vmul.f32 %v1276_v16, %v1268_v43 }
 0x20c   : > { %v1252_v4 = vsub.f32 1.0, %v1251_v1 }
 0x20d   : > { %v1289_v10 = vadd.f32 1.0, %v1288_v5  ;;  %v1278_v27 = vadd.f32 1.1283791, %v1277_v21 }
 0x20e   : > { %v1253_v7 = vmul.f32 %v1412_v46, %v1252_v4 }
 0x20f   : > { %1413 = vrcp.f32 %v1289_v10  ;;  %v1301_v17 = vand.u32 2147483648, %v1289_v10  ;;  %v1299_v29 = vand.u32 2147483647, %v1289_v10  ;;  %vm1295_vm7 = vweird.f32 %v1289_v10 }
 0x210   : > { %v1254_v8 = vadd.f32 %v1412_v46, %v1253_v7  ;;  %v1279_v32 = vmul.f32 %v1278_v27, %v1721_v37 }
 0x211   : > { %v1302_v31 = vor.u32 1.1754944e-38, %v1301_v17  ;;  %vm1300_vm9 = vcmp.eq.f32.partialorder %v1299_v29, 8.507059e+37 }
 0x212   : > { %v1258_v14 = vsel %vm1257_vm4, %v1412_v46, %v1254_v8 }
 0x213   : > { %v1263_v0 = vsel %vm1260_vm5, %v1262_v12, %v1258_v14 }
 0x214   : > { %v1264_v18 = vmul.f32 %v1263_v0, %v1239_v13 }
 0x215   : > { %v1414_v19 = vpop.eup %1413 }
 0x216   : > { %v1377_v20 = vclamps-f32 %v1264_v18, 1.0  ;;  %v1291_v22 = vmul.f32 %v1414_v19, %v1289_v10  ;;  %vm1296_vm6 = vweird.f32 %v1414_v19 }
 0x217   : > { %vm1297_vm8 = vmor %vm1295_vm7, %vm1296_vm6 }
 0x218   : > { %v1307_v24 = vadd.f32 1.0, %v1377_v20  ;;  %v1292_v25 = vsub.f32 1.0, %v1291_v22 }
 0x21a   : > { %v1309_v26 = vmul.f32 %v1307_v24, %v1223_v23  ;;  %v1293_v28 = vmul.f32 %v1414_v19, %v1292_v25 }
 0x21c   : > { %1311 = vst [vmem:[%s197_s23] sm:$0xff] %v1309_v26  ;;  %v1294_v30 = vadd.f32 %v1414_v19, %v1293_v28 }
 0x21e   : > { %v1298_v15 = vsel %vm1297_vm8, %v1414_v19, %v1294_v30 }
 0x21f   : > { %v1303_v35 = vsel %vm1300_vm9, %v1302_v31, %v1298_v15 }
 0x220   : > { %v1304_v36 = vmul.f32 %v1303_v35, %v1279_v32 }
 0x222   : > { %v1378_v38 = vclamps-f32 %v1304_v36, 1.0 }
 0x224   : > { %v1308_v40 = vadd.f32 1.0, %v1378_v38 }
 0x226   : > { %v1310_v41 = vmul.f32 %v1308_v40, %v1224_v39 }
 0x228   : > { %1312 = vst [vmem:[%s197_s23 + $0x8] sm:$0xff] %v1310_v41 }
 0x229 PF: > { %s14_s15 = sadd.s32 1, %s1421_s15  }
 0x22a   : > { %p11_p4 = scmp.ge.s32.totalorder %s14_s15, 4  }
 0x22c   :  { %13 = sbr.rel (!%p11_p4) target bundleno = 1 (0x1), region = 66 }

</bundles_post_ra>
